<compile_context>
chip_gen: v7x
topology: tpu7x:2x2x1
jax: 0.10.0
libtpu: 0.0.40
codegen_flags: <defaults>
</compile_context>

<pallas_src>
import functools
import math

import jax
import jax.numpy as jnp
from jax import lax
from jax.experimental import pallas as pl
from jax.experimental.pallas import tpu as pltpu

D = 64            # hidden width used by GNNDSE
EDGE_DIM = 7
NUM_LAYERS = 3    # conv_first + 2 conv_layers
TARGETS = ["LUTs", "FFs", "BRAMs", "DSPs", "clock", "latency"]

NODE_TILE = 128   # projection tile over nodes
DST_TILE = 128    # attention dst tile
SRC_TILE = 128    # attention src tile


# ---------------------------------------------------------------------------
# helper: single grid step, whole-array blocks resident in VMEM (small tensors)
# ---------------------------------------------------------------------------
def _full_call(kernel, out_shape, *args):
    in_specs = [
        pl.BlockSpec(a.shape, lambda *_, nd=a.ndim: (0,) * nd) for a in args
    ]
    out_specs = pl.BlockSpec(
        out_shape.shape, lambda *_, nd=len(out_shape.shape): (0,) * nd
    )
    return pl.pallas_call(
        kernel,
        out_shape=out_shape,
        grid=(1,),
        in_specs=in_specs,
        out_specs=out_specs,
        compiler_params=pltpu.CompilerParams(dimension_semantics=("arbitrary",)),
    )(*args)


def _elu(v):
    return jnp.where(v > 0.0, v, jnp.expm1(v))


# ---------------------------------------------------------------------------
# Kernel 1: fused Q/K/V/skip projection (+ q @ We^T) for one conv layer
#   w_all = [Wq*scale | Ws | Wk | Wv]  (scale = 1/sqrt(D) folded into Wq, bq)
#   outputs: qs = [q | skip], kv = [k | v], qe = q @ We^T
# ---------------------------------------------------------------------------
def _proj_kernel(x_ref, w_ref, b_ref, we_ref, qs_ref, kv_ref, qe_ref):
    y = jnp.dot(x_ref[...], w_ref[...], preferred_element_type=jnp.float32)
    y = y + b_ref[...]
    qs = y[:, : 2 * D]
    qs_ref[...] = qs
    kv_ref[...] = y[:, 2 * D:]
    # qe[n, c] = sum_d q[n, d] * We[c, d]
    qe_ref[...] = lax.dot_general(
        qs[:, :D], we_ref[...], (((1,), (1,)), ((), ())),
        preferred_element_type=jnp.float32)


# ---------------------------------------------------------------------------
# Kernel 2: tiled masked transformer attention with online softmax
#   score_ij = q_i.k_j + qe_i.ea_ij          (scale already folded into q)
#   out_i    = sum_j a_ij v_j + (sum_j a_ij ea_ij) @ We + skip_i
# ---------------------------------------------------------------------------
def _attn_kernel(qs_ref, qe_ref, kv_ref, mask_ref, ea_ref, we_ref,
                 o_ref, m_sc, l_sc, acc_sc, *, activation):
    j = pl.program_id(1)

    @pl.when(j == 0)
    def _():
        m_sc[...] = jnp.full_like(m_sc, -1e30)
        l_sc[...] = jnp.zeros_like(l_sc)
        acc_sc[...] = jnp.zeros_like(acc_sc)

    qs = qs_ref[...]
    kv = kv_ref[...]
    q = qs[:, :D]                    # pre-scaled by 1/sqrt(D)
    k = kv[:, :D]
    v = kv[:, D:]
    qe = qe_ref[...]                 # [TD, 7]
    mask = mask_ref[...]             # [TD, TS]

    # scores: q.k^T + sum_c qe[:,c] * ea[c]
    s = lax.dot_general(q, k, (((1,), (1,)), ((), ())),
                        preferred_element_type=jnp.float32)
    for c in range(EDGE_DIM):
        s = s + qe[:, c:c + 1] * ea_ref[c]
    s = jnp.where(mask > 0.0, s, jnp.float32(-1e30))

    m_prev = m_sc[...]
    m_new = jnp.maximum(m_prev, jnp.max(s, axis=1, keepdims=True))
    a = jnp.exp(m_prev - m_new)
    p = jnp.exp(s - m_new) * mask
    l_sc[...] = a * l_sc[...] + jnp.sum(p, axis=1, keepdims=True)

    acc = a * acc_sc[...] + jnp.dot(p, v, preferred_element_type=jnp.float32)
    # edge contribution: sum_j p_ij * (ea_ij @ We) = sum_c rowsum(p*ea_c) * We[c,:]
    for c in range(EDGE_DIM):
        rc = jnp.sum(p * ea_ref[c], axis=1, keepdims=True)      # [TD, 1]
        acc = acc + rc * we_ref[c:c + 1, :]                      # [1, D]
    acc_sc[...] = acc
    m_sc[...] = m_new

    @pl.when(j == pl.num_programs(1) - 1)
    def _():
        inv = pl.reciprocal(jnp.maximum(l_sc[...], 1e-20), approx=True)
        out = acc_sc[...] * inv + qs_ref[:, D:]                  # + skip
        if activation == "elu":
            out = _elu(out)
        o_ref[...] = out


# ---------------------------------------------------------------------------
# Kernel 3: JK-max + gate MLP + segment softmax + attention pooling
# ---------------------------------------------------------------------------
def _pool_kernel(stk_ref, m_ref, mt_ref, w1_ref, b1_ref, w2_ref, b2_ref,
                 o_ref, *, num_layers):
    jk = stk_ref[0]
    for l in range(1, num_layers):
        jk = jnp.maximum(jk, stk_ref[l])

    g = jnp.dot(jk, w1_ref[...], preferred_element_type=jnp.float32) + b1_ref[...]
    g = jnp.maximum(g, 0.0)
    gate = jnp.dot(g, w2_ref[...], preferred_element_type=jnp.float32) + b2_ref[...]

    M = m_ref[...]                    # [B, N]
    Mt = mt_ref[...]                  # [N, B]
    valid = jnp.sum(Mt, axis=1, keepdims=True)        # 1 for real nodes, 0 for pad
    gate = gate * valid

    neg = jnp.float32(-1e30)
    masked = jnp.where(Mt > 0.0, gate, neg)            # [N, B]
    segmax = jnp.max(masked, axis=0, keepdims=True)    # [1, B]
    node_max = jnp.sum(Mt * segmax, axis=1, keepdims=True)
    num = jnp.exp(gate - node_max)                     # [N, 1]
    seg_den = jnp.sum(Mt * num, axis=0, keepdims=True)
    node_den = jnp.sum(Mt * seg_den, axis=1, keepdims=True)
    soft = valid * num / jnp.maximum(node_den, 1e-30)  # segment softmax
    o_ref[...] = jnp.dot(M, soft * jk, preferred_element_type=jnp.float32)


# ---------------------------------------------------------------------------
# Kernel 4: all 6 regression MLP heads fused (concat / block-diag weights)
# ---------------------------------------------------------------------------
def _heads_kernel(x_ref, w1, b1, w2, b2, w3, b3, w4, b4, o_ref):
    h = _elu(jnp.dot(x_ref[...], w1[...], preferred_element_type=jnp.float32) + b1[...])
    h = _elu(jnp.dot(h, w2[...], preferred_element_type=jnp.float32) + b2[...])
    h = _elu(jnp.dot(h, w3[...], preferred_element_type=jnp.float32) + b3[...])
    o_ref[...] = jnp.dot(h, w4[...], preferred_element_type=jnp.float32) + b4[...]


# ---------------------------------------------------------------------------
# Model glue
# ---------------------------------------------------------------------------
def transformer_conv(x, mask, ea_fm, p, activation):
    """PyG TransformerConv(heads=1, concat=True, root_weight=True, edge_dim=7)."""
    n_pad, cin = x.shape
    qs, kv, qe = pl.pallas_call(
        _proj_kernel,
        out_shape=(jax.ShapeDtypeStruct((n_pad, 2 * D), jnp.float32),
                   jax.ShapeDtypeStruct((n_pad, 2 * D), jnp.float32),
                   jax.ShapeDtypeStruct((n_pad, EDGE_DIM), jnp.float32)),
        grid=(n_pad // NODE_TILE,),
        in_specs=[pl.BlockSpec((NODE_TILE, cin), lambda i: (i, 0)),
                  pl.BlockSpec((cin, 4 * D), lambda i: (0, 0)),
                  pl.BlockSpec((1, 4 * D), lambda i: (0, 0)),
                  pl.BlockSpec((EDGE_DIM, D), lambda i: (0, 0))],
        out_specs=(pl.BlockSpec((NODE_TILE, 2 * D), lambda i: (i, 0)),
                   pl.BlockSpec((NODE_TILE, 2 * D), lambda i: (i, 0)),
                   pl.BlockSpec((NODE_TILE, EDGE_DIM), lambda i: (i, 0))),
        compiler_params=pltpu.CompilerParams(dimension_semantics=("parallel",)),
    )(x, p["w_all"], p["b_all"], p["we"])

    out = pl.pallas_call(
        functools.partial(_attn_kernel, activation=activation),
        out_shape=jax.ShapeDtypeStruct((n_pad, D), jnp.float32),
        grid=(n_pad // DST_TILE, n_pad // SRC_TILE),
        in_specs=[pl.BlockSpec((DST_TILE, 2 * D), lambda i, j: (i, 0)),
                  pl.BlockSpec((DST_TILE, EDGE_DIM), lambda i, j: (i, 0)),
                  pl.BlockSpec((SRC_TILE, 2 * D), lambda i, j: (j, 0)),
                  pl.BlockSpec((DST_TILE, SRC_TILE), lambda i, j: (i, j)),
                  pl.BlockSpec((EDGE_DIM, DST_TILE, SRC_TILE), lambda i, j: (0, i, j)),
                  pl.BlockSpec((EDGE_DIM, D), lambda i, j: (0, 0))],
        out_specs=pl.BlockSpec((DST_TILE, D), lambda i, j: (i, 0)),
        scratch_shapes=[pltpu.VMEM((DST_TILE, 1), jnp.float32),
                        pltpu.VMEM((DST_TILE, 1), jnp.float32),
                        pltpu.VMEM((DST_TILE, D), jnp.float32)],
        compiler_params=pltpu.CompilerParams(
            dimension_semantics=("parallel", "arbitrary")),
    )(qs, qe, kv, mask, ea_fm, p["we"])
    return out


def gnndse_forward(params, x_p, mask, ea_fm, m_mat, mt_mat, y):
    num_conv = len(params["convs"])
    outs = []
    h = x_p
    for i in range(num_conv):
        act = "elu" if i != num_conv - 1 else "none"
        h = transformer_conv(h, mask, ea_fm, params["convs"][i], act)
        outs.append(h)

    stacked = jnp.stack(outs, axis=0)                 # [L, N_pad, D]

    g = params["gate"]
    num_graphs = m_mat.shape[0]
    pooled = _full_call(
        functools.partial(_pool_kernel, num_layers=num_conv),
        jax.ShapeDtypeStruct((num_graphs, D), jnp.float32),
        stacked, m_mat, mt_mat, g["w1"], g["b1"], g["w2"], g["b2"])

    hd = params["heads"]
    preds = _full_call(
        _heads_kernel,
        jax.ShapeDtypeStruct((num_graphs, len(TARGETS)), jnp.float32),
        pooled, hd["w1"], hd["b1"], hd["w2"], hd["b2"],
        hd["w3"], hd["b3"], hd["w4"], hd["b4"])

    # scalar RMSE reductions kept in plain JAX (tiny, not a hot path)
    out_dict, loss_dict = {}, {}
    total_loss = jnp.float32(0.0)
    for i, tgt in enumerate(TARGETS):
        pred = preds[:, i:i + 1]
        gt = y[:, i:i + 1]
        loss = jnp.sqrt(jnp.mean((pred - gt) ** 2))
        out_dict[tgt] = pred
        loss_dict[tgt] = loss
        total_loss = total_loss + loss
    return out_dict, total_loss, loss_dict


# ---------------------------------------------------------------------------
# Input preparation (host/JAX glue): densify edge list, pad N to node tile
# ---------------------------------------------------------------------------
def prepare_graph(x, src, dst, edge_attr, batch, num_graphs, tile=NODE_TILE):
    n, in_ch = x.shape
    n_pad = ((n + tile - 1) // tile) * tile
    x_p = jnp.zeros((n_pad, in_ch), jnp.float32).at[:n, :].set(x)
    mask = jnp.zeros((n_pad, n_pad), jnp.float32).at[dst, src].set(1.0)
    ea_fm = (jnp.zeros((EDGE_DIM, n_pad, n_pad), jnp.float32)
             .at[:, dst, src].set(edge_attr.T))                 # feature-major
    m_small = (batch[None, :] == jnp.arange(num_graphs)[:, None]).astype(jnp.float32)
    m_mat = jnp.zeros((num_graphs, n_pad), jnp.float32).at[:, :n].set(m_small)
    mt_mat = m_mat.T
    return x_p, mask, ea_fm, m_mat, mt_mat


# ---------------------------------------------------------------------------
# Deterministic parameter initialization (shapes from GNNDSE.__init__)
# ---------------------------------------------------------------------------
def _xavier_normal(key, shape, gain=1.0):
    fan_in, fan_out = shape
    std = gain * math.sqrt(2.0 / (fan_in + fan_out))
    return std * jax.random.normal(key, shape, jnp.float32)


def _block_diag(mats):
    rows = sum(m.shape[0] for m in mats)
    cols = sum(m.shape[1] for m in mats)
    out = jnp.zeros((rows, cols), jnp.float32)
    r = c = 0
    for m in mats:
        out = out.at[r:r + m.shape[0], c:c + m.shape[1]].set(m)
        r += m.shape[0]
        c += m.shape[1]
    return out


def init_params(key, in_channels, num_layers):
    keys = iter(jax.random.split(key, 256))
    gain_relu = math.sqrt(2.0)
    scale = 1.0 / math.sqrt(D)
    params = {"convs": [], "gate": {}, "heads": {}}

    for l in range(num_layers):
        cin = in_channels if l == 0 else D
        wq = _xavier_normal(next(keys), (cin, D))
        wk = _xavier_normal(next(keys), (cin, D))
        wv = _xavier_normal(next(keys), (cin, D))
        ws = _xavier_normal(next(keys), (cin, D))
        we = _xavier_normal(next(keys), (EDGE_DIM, D))    # lin_edge, bias=False
        bq = jnp.zeros((D,), jnp.float32)
        bk = jnp.zeros((D,), jnp.float32)
        bv = jnp.zeros((D,), jnp.float32)
        bs = jnp.zeros((D,), jnp.float32)
        # packed: [ q*scale | skip | k | v ], 1/sqrt(D) folded into q
        w_all = jnp.concatenate([wq * scale, ws, wk, wv], axis=1)
        b_all = jnp.concatenate([bq * scale, bs, bk, bv]).reshape(1, 4 * D)
        params["convs"].append({"w_all": w_all, "b_all": b_all, "we": we})

    params["gate"] = {
        "w1": _xavier_normal(next(keys), (D, D)),
        "b1": jnp.zeros((1, D), jnp.float32),
        "w2": _xavier_normal(next(keys), (D, 1)),
        "b2": jnp.zeros((1, 1), jnp.float32),
    }

    # 6 heads, channels [64, 32, 16, 8, 1]; fused via concat / block-diagonal weights
    layer_channels = [D, D // 2, D // 4, D // 8, 1]
    head_ws = [
        [_xavier_normal(next(keys), (a, b), gain_relu)
         for a, b in zip(layer_channels[:-1], layer_channels[1:])]
        for _ in range(6)
    ]
    params["heads"] = {
        "w1": jnp.concatenate([h[0] for h in head_ws], axis=1),
        "b1": jnp.zeros((1, 6 * layer_channels[1]), jnp.float32),
        "w2": _block_diag([h[1] for h in head_ws]),
        "b2": jnp.zeros((1, 6 * layer_channels[2]), jnp.float32),
        "w3": _block_diag([h[2] for h in head_ws]),
        "b3": jnp.zeros((1, 6 * layer_channels[3]), jnp.float32),
        "w4": _block_diag([h[3] for h in head_ws]),
        "b4": jnp.zeros((1, 6), jnp.float32),
    }
    return params


# ---------------------------------------------------------------------------
if __name__ == "__main__":
    key = jax.random.PRNGKey(0)
    N = 16            # total nodes (2 graphs x 8 nodes)
    IN_CH = 16
    NUM_GRAPHS = 2

    k_params, kx, kea, ky = jax.random.split(key, 4)
    params = init_params(k_params, IN_CH, NUM_LAYERS)

    x = jax.random.normal(kx, (N, IN_CH), jnp.float32)
    batch = jnp.array([0] * 8 + [1] * 8, jnp.int32)

    # directed ring + skip edges within each graph; every node has >=1 in-edge,
    # and (src, dst) pairs are unique so the dense adjacency is exact.
    src_list, dst_list = [], []
    for g in range(NUM_GRAPHS):
        base = g * 8
        for j in range(8):
            src_list.append(base + j)
            dst_list.append(base + (j + 1) % 8)
            src_list.append(base + (j + 3) % 8)
            dst_list.append(base + j)
    src = jnp.array(src_list, jnp.int32)
    dst = jnp.array(dst_list, jnp.int32)
    E = int(src.shape[0])
    edge_attr = jax.random.normal(kea, (E, EDGE_DIM), jnp.float32)
    y = jax.random.normal(ky, (NUM_GRAPHS, 6), jnp.float32)

    x_p, mask, ea_fm, m_mat, mt_mat = prepare_graph(
        x, src, dst, edge_attr, batch, NUM_GRAPHS)

    out_dict, total_loss, loss_dict = gnndse_forward(
        params, x_p, mask, ea_fm, m_mat, mt_mat, y)

    jax.block_until_ready(total_loss)
    for v in out_dict.values():
        jax.block_until_ready(v)
    print("KERNEL_OK")
</pallas_src>

<mosaic_0001>
module attributes {stable_mosaic.version = 11 : i64} {
  func.func @_proj_kernel(%arg0: i32, %arg1: memref<128x16xf32, #tpu.memory_space<vmem>>, %arg2: memref<16x256xf32, #tpu.memory_space<vmem>>, %arg3: memref<1x256xf32, #tpu.memory_space<vmem>>, %arg4: memref<7x64xf32, #tpu.memory_space<vmem>>, %arg5: memref<128x128xf32, #tpu.memory_space<vmem>>, %arg6: memref<128x128xf32, #tpu.memory_space<vmem>>, %arg7: memref<128x7xf32, #tpu.memory_space<vmem>>) attributes {dimension_semantics = [#tpu.dimension_semantics<parallel>], iteration_bounds = array<i64: 1>, scalar_prefetch = 0 : i64, scratch_operands = 0 : i64, tpu.core_type = #tpu.core_type<tc>, window_params = [{transform_indices = @transform_0, window_bounds = array<i64: 128, 16>}, {pipeline_mode = #tpu.pipeline_mode<synchronous>, transform_indices = @transform_1, window_bounds = array<i64: 16, 256>}, {pipeline_mode = #tpu.pipeline_mode<synchronous>, transform_indices = @transform_2, window_bounds = array<i64: 1, 256>}, {pipeline_mode = #tpu.pipeline_mode<synchronous>, transform_indices = @transform_3, window_bounds = array<i64: 7, 64>}, {transform_indices = @transform_4, window_bounds = array<i64: 128, 128>}, {transform_indices = @transform_5, window_bounds = array<i64: 128, 128>}, {transform_indices = @transform_6, window_bounds = array<i64: 128, 7>}]} {
    %c0 = arith.constant 0 : index
    %c0_0 = arith.constant 0 : index
    %0 = vector.load %arg1[%c0, %c0_0] : memref<128x16xf32, #tpu.memory_space<vmem>>, vector<128x16xf32>
    %c0_1 = arith.constant 0 : index
    %c0_2 = arith.constant 0 : index
    %1 = vector.load %arg2[%c0_1, %c0_2] : memref<16x256xf32, #tpu.memory_space<vmem>>, vector<16x256xf32>
    %cst = arith.constant dense<0.000000e+00> : vector<128x256xf32>
    %2 = tpu.matmul %0, %1, %cst {dimension_numbers = #tpu.dot_dimension_numbers<[1], [0], [0], [1], [0, 0, 1, 1], [], []>} : vector<128x16xf32>, vector<16x256xf32>, vector<128x256xf32> -> vector<128x256xf32>
    %c0_3 = arith.constant 0 : index
    %c0_4 = arith.constant 0 : index
    %3 = vector.load %arg3[%c0_3, %c0_4] : memref<1x256xf32, #tpu.memory_space<vmem>>, vector<1x256xf32>
    %4 = vector.broadcast %3 : vector<1x256xf32> to vector<128x256xf32>
    %5 = arith.addf %2, %4 : vector<128x256xf32>
    %6 = vector.extract_strided_slice %5 {offsets = [0, 0], sizes = [128, 128], strides = [1, 1]} : vector<128x256xf32> to vector<128x128xf32>
    %c0_5 = arith.constant 0 : index
    %c0_6 = arith.constant 0 : index
    %7 = vector.load %arg5[%c0_5, %c0_6] : memref<128x128xf32, #tpu.memory_space<vmem>>, vector<128x128xf32>
    tpu.vector_store %arg5[%c0_5, %c0_6], %6 {strides = array<i32>} : memref<128x128xf32, #tpu.memory_space<vmem>>, vector<128x128xf32>,
    %8 = vector.extract_strided_slice %5 {offsets = [0, 128], sizes = [128, 128], strides = [1, 1]} : vector<128x256xf32> to vector<128x128xf32>
    %c0_7 = arith.constant 0 : index
    %c0_8 = arith.constant 0 : index
    %9 = vector.load %arg6[%c0_7, %c0_8] : memref<128x128xf32, #tpu.memory_space<vmem>>, vector<128x128xf32>
    tpu.vector_store %arg6[%c0_7, %c0_8], %8 {strides = array<i32>} : memref<128x128xf32, #tpu.memory_space<vmem>>, vector<128x128xf32>,
    %10 = vector.extract_strided_slice %6 {offsets = [0, 0], sizes = [128, 64], strides = [1, 1]} : vector<128x128xf32> to vector<128x64xf32>
    %c0_9 = arith.constant 0 : index
    %c0_10 = arith.constant 0 : index
    %11 = vector.load %arg4[%c0_9, %c0_10] : memref<7x64xf32, #tpu.memory_space<vmem>>, vector<7x64xf32>
    %cst_11 = arith.constant dense<0.000000e+00> : vector<128x7xf32>
    %12 = tpu.matmul %10, %11, %cst_11 {dimension_numbers = #tpu.dot_dimension_numbers<[1], [1], [0], [0], [0, 0, 1, 0], [], []>} : vector<128x64xf32>, vector<7x64xf32>, vector<128x7xf32> -> vector<128x7xf32>
    %c0_12 = arith.constant 0 : index
    %c0_13 = arith.constant 0 : index
    %13 = vector.load %arg7[%c0_12, %c0_13] : memref<128x7xf32, #tpu.memory_space<vmem>>, vector<128x7xf32>
    tpu.vector_store %arg7[%c0_12, %c0_13], %12 {strides = array<i32>} : memref<128x7xf32, #tpu.memory_space<vmem>>, vector<128x7xf32>,
    return
  }
  func.func @transform_0(%arg0: i32) -> (i32, i32) {
    %c0_i32 = arith.constant 0 : i32
    %c0_i32_0 = arith.constant 0 : i32
    return %arg0, %c0_i32 : i32, i32
  }
  func.func @transform_1(%arg0: i32) -> (i32, i32) {
    %c0_i32 = arith.constant 0 : i32
    %c0_i32_0 = arith.constant 0 : i32
    %c0_i32_1 = arith.constant 0 : i32
    return %c0_i32, %c0_i32_0 : i32, i32
  }
  func.func @transform_2(%arg0: i32) -> (i32, i32) {
    %c0_i32 = arith.constant 0 : i32
    %c0_i32_0 = arith.constant 0 : i32
    %c0_i32_1 = arith.constant 0 : i32
    return %c0_i32, %c0_i32_0 : i32, i32
  }
  func.func @transform_3(%arg0: i32) -> (i32, i32) {
    %c0_i32 = arith.constant 0 : i32
    %c0_i32_0 = arith.constant 0 : i32
    %c0_i32_1 = arith.constant 0 : i32
    return %c0_i32, %c0_i32_0 : i32, i32
  }
  func.func @transform_4(%arg0: i32) -> (i32, i32) {
    %c0_i32 = arith.constant 0 : i32
    %c0_i32_0 = arith.constant 0 : i32
    return %arg0, %c0_i32 : i32, i32
  }
  func.func @transform_5(%arg0: i32) -> (i32, i32) {
    %c0_i32 = arith.constant 0 : i32
    %c0_i32_0 = arith.constant 0 : i32
    return %arg0, %c0_i32 : i32, i32
  }
  func.func @transform_6(%arg0: i32) -> (i32, i32) {
    %c0_i32 = arith.constant 0 : i32
    %c0_i32_0 = arith.constant 0 : i32
    return %arg0, %c0_i32 : i32, i32
  }
}

</mosaic_0001>

<bundles_post_ra>
// kernel: tpu_custom_call.1
= control target key start
LH: loop header
LB: loop body
LE: loop exit
PB: predicated region body
PF: predicated region fallthrough
CT: control target
= control target key end

     0   :  { %12 = vsyncpa [#allocation3], 0  ;;  %v682_v5 = vmov 0.0   ;;  %vm54_vm0 = vcmask 130048   ;;  %s969_s0 = inlined_call_operand.vmem [shape: f32[128,16], index: 0, kind: input, shape index: {}]   ;;  %s970_s1 = inlined_call_operand.vmem [shape: f32[16,256], index: 1, kind: input, shape index: {}]   ;;  %s971_s2 = inlined_call_operand.vmem [shape: f32[1,256], index: 2, kind: input, shape index: {}]   ;;  %s972_s3 = inlined_call_operand.vmem [shape: f32[7,64], index: 3, kind: input, shape index: {}]   ;;  %s973_s4 = inlined_call_operand.hbm [shape: f32[128,128], index: 4, kind: output, shape index: {0}]   ;;  %s974_s5 = inlined_call_operand.hbm [shape: f32[128,128], index: 5, kind: output, shape index: {1}]   ;;  %s975_s6 = inlined_call_operand.vmem [shape: f32[128,7], index: 6, kind: output, shape index: {2}]  }
   0x1   :  { %v39_v0 = vld [vmem:[%s970_s1 + $0x8] sm:$0xff]  ;;  %v41_v1 = vld [vmem:[%s970_s1 + $0x18] sm:$0xff]  ;;  %v38_v2 = vld [vmem:[%s970_s1] sm:$0xff]  ;;  %167 = vmatprep.mubr.f32.mxu0 %v682_v5  ;;  %239 = vmatprep.mubr.f32.mxu1 %v682_v5 }
   0x2   :  { %v623_v3 = vpack.c.bf16 %v41_v1, %v39_v0  ;;  %v40_v4 = vld [vmem:[%s970_s1 + $0x10] sm:$0xff]  ;;  %v22_v7 = vld [vmem:[%s969_s0] sm:$0xff] }
   0x3   :  { %v625_v6 = vpack.c.bf16 %v40_v4, %v38_v2  ;;  %v34_v8 = vld [vmem:[%s969_s0 + $0x60] sm:$0xff] }
   0x4   :  { %624 = vmatprep.subr.bf16.mxu0 %v623_v3  ;;  %627 = vmatprep.subr.bf16.mxu1 %v623_v3 }
   0x5   :  { %626 = vmatpush1.bf16.msra.mxu0 %v625_v6  ;;  %628 = vmatpush1.bf16.msra.mxu1 %v625_v6 }
   0x8   :  { %547 = vmatmul.mubr.msk.f32.vlgmr.msra.gmra.mrb[0].mxu0 %vm54_vm0, %v22_v7  ;;  %559 = vmatmul.mubr.msk.f32.vlgmr.msra.gmra.mrb[0].mxu1 %vm54_vm0, %v34_v8 }
   0x9   :  { %13 = vsyncpa [#allocation5], 0  ;;  %173 = vmatprep.mubr.f32.mxu0 %v682_v5  ;;  %v23_v9 = vld [vmem:[%s969_s0 + $0x8] sm:$0xff]  ;;  %245 = vmatprep.mubr.f32.mxu1 %v682_v5  ;;  %v24_v11 = vld [vmem:[%s969_s0 + $0x10] sm:$0xff]  ;;  %vm297_vm1 = vcmask 523264   ;;  %v44_v24 = vlaneseq }
   0xa   :  { %v35_v10 = vld [vmem:[%s969_s0 + $0x68] sm:$0xff]  ;;  %v36_v12 = vld [vmem:[%s969_s0 + $0x70] sm:$0xff]  ;;  %v25_v13 = vld [vmem:[%s969_s0 + $0x18] sm:$0xff] }
   0xb   :  { %v37_v14 = vld [vmem:[%s969_s0 + $0x78] sm:$0xff]  ;;  %v26_v15 = vld [vmem:[%s969_s0 + $0x20] sm:$0xff]  ;;  %v27_v16 = vld [vmem:[%s969_s0 + $0x28] sm:$0xff]  ;;  %v45_v25 = vshrl.u32 %v44_v24, 7 }
   0xc   :  { %548 = vmatmul.mubr.msk.f32.gmra.mrb[2].mxu0 %vm54_vm0, %v23_v9  ;;  %560 = vmatmul.mubr.msk.f32.gmra.mrb[2].mxu1 %vm54_vm0, %v35_v10  ;;  %v28_v17 = vld [vmem:[%s969_s0 + $0x30] sm:$0xff]  ;;  %v29_v18 = vld [vmem:[%s969_s0 + $0x38] sm:$0xff]  ;;  %v30_v19 = vld [vmem:[%s969_s0 + $0x40] sm:$0xff] }
   0xd   :  { %179 = vmatprep.mubr.f32.mxu0 %v682_v5  ;;  %251 = vmatprep.mubr.f32.mxu1 %v682_v5  ;;  %v31_v20 = vld [vmem:[%s969_s0 + $0x48] sm:$0xff]  ;;  %v32_v21 = vld [vmem:[%s969_s0 + $0x50] sm:$0xff]  ;;  %v33_v22 = vld [vmem:[%s969_s0 + $0x58] sm:$0xff]  ;;  %v46_v26 = vsub.s32 0, %v45_v25  ;;  %v50_v28 = vsub.s32 1, %v45_v25  ;;  %s683_s0 = smov [#allocation2]  }
   0xe   :  { %v296_v23 = vld [vmem:[%s972_s3] sm:$0x7f]  ;;  %s684_s3 = smov [#allocation4]  }
   0xf   :  { %597 = vmatprep.subr.msk.mxu1 %vm297_vm1, %v296_v23  ;;  %v42_v27 = vld [vmem:[%s971_s2] sm:$0x3]  ;;  %s516_s2 = sshll.u32 %s683_s0, 4  ;;  %s528_s15 = sshll.u32 %s684_s3, 4  ;;  %s517_s2 = int_to_ptr.vmem [resolvable:$true] %s516_s2  ;;  %s874_s15 = int_to_ptr.vmem [resolvable:$true] %s528_s15 }
  0x10   :  { %549 = vmatmul.mubr.msk.f32.gmra.mrb[4].mxu0 %vm54_vm0, %v24_v11  ;;  %561 = vmatmul.mubr.msk.f32.gmra.mrb[4].mxu1 %vm54_vm0, %v36_v12  ;;  %v806_v29 = vrot.slane %v42_v27, %v46_v26  ;;  %v808_v30 = vrot.slane %v42_v27, %v50_v28  ;;  %s634_s16 = scalar_lea.vmem %s517_s2, 2048  ;;  %p639_p1 = scmp.lt.s32.totalorder %s517_s2, %s517_s2 }
  0x11   :  { %185 = vmatprep.mubr.f32.mxu0 %v682_v5  ;;  %257 = vmatprep.mubr.f32.mxu1 %v682_v5  ;;  %p635_p0 = scmp.ne.s32.totalorder %s517_s2, %s634_s16  ;;  %p640_p2 = scmp.lt.s32.totalorder %s634_s16, %s634_s16 }
  0x12   :  { %598 = vmatpush3.xpose.msk.msra.mxu1 %vm297_vm1, %v296_v23 }
  0x13   :  { %p641_p3 = por %p640_p2, %p639_p1 }
  0x14   :  { %550 = vmatmul.mubr.msk.f32.gmra.mrb[6].mxu0 %vm54_vm0, %v25_v13  ;;  %562 = vmatmul.mubr.msk.f32.gmra.mrb[6].mxu1 %vm54_vm0, %v37_v14 }
  0x15   :  { %191 = vmatprep.mubr.f32.mxu0 %v682_v5  ;;  %p642_p4 = pnand %p641_p3, %p635_p0 }
  0x18   :  { %551 = vmatmul.mubr.msk.f32.gmra.mrb[8].mxu0 %vm54_vm0, %v26_v15 }
  0x19   :  { %197 = vmatprep.mubr.f32.mxu0 %v682_v5 }
  0x1c   :  { %552 = vmatmul.mubr.msk.f32.gmra.mrb[10].mxu0 %vm54_vm0, %v27_v16 }
  0x1d   :  { %203 = vmatprep.mubr.f32.mxu0 %v682_v5 }
  0x20   :  { %553 = vmatmul.mubr.msk.f32.gmra.mrb[12].mxu0 %vm54_vm0, %v28_v17 }
  0x21   :  { %209 = vmatprep.mubr.f32.mxu0 %v682_v5 }
  0x24   :  { %554 = vmatmul.mubr.msk.f32.gmra.mrb[14].mxu0 %vm54_vm0, %v29_v18 }
  0x25   :  { %215 = vmatprep.mubr.f32.mxu0 %v682_v5 }
  0x28   :  { %555 = vmatmul.mubr.msk.f32.gmra.mrb[16].mxu0 %vm54_vm0, %v30_v19 }
  0x29   :  { %221 = vmatprep.mubr.f32.mxu0 %v682_v5 }
  0x2c   :  { %556 = vmatmul.mubr.msk.f32.gmra.mrb[18].mxu0 %vm54_vm0, %v31_v20 }
  0x2d   :  { %227 = vmatprep.mubr.f32.mxu0 %v682_v5 }
  0x30   :  { %557 = vmatmul.mubr.msk.f32.gmra.mrb[20].mxu0 %vm54_vm0, %v32_v21 }
  0x31   :  { %233 = vmatprep.mubr.f32.mxu0 %v682_v5 }
  0x34   :  { %558 = vmatmul.mubr.msk.f32.gmra.mrb[22].mxu0 %vm54_vm0, %v33_v22 }
  0xdb   :  { %v169_v31 = vpop.f32.mrb[0].mxu0  ;;  %v241_v32 = vpop.f32.mrb[0].mxu1 }
  0xdc   :  { %v170_v33 = vadd.f32 %v169_v31, %v806_v29  ;;  %v171_v34 = vpop.f32.mrb[1].mxu0  ;;  %v812_v35 = vadd.f32 %v241_v32, %v806_v29  ;;  %v243_v36 = vpop.f32.mrb[1].mxu1 }
  0xdd   :  { %v172_v37 = vadd.f32 %v171_v34, %v808_v30  ;;  %v244_v38 = vadd.f32 %v243_v36, %v808_v30 }
  0xde   :  { %264 = vst [vmem:[#allocation2] sm:$0xff] %v170_v33  ;;  %599 = vmatprep.mubr.msk.f32.mxu1 %vm297_vm1, %v170_v33  ;;  %276 = vst [vmem:[#allocation2 + $0x60] sm:$0xff] %v812_v35 }
  0xdf   :  { %280 = vst [vmem:[#allocation4] sm:$0xff] %v172_v37  ;;  %v175_v39 = vpop.f32.mrb[2].mxu0  ;;  %292 = vst [vmem:[#allocation4 + $0x60] sm:$0xff] %v244_v38  ;;  %v247_v40 = vpop.f32.mrb[2].mxu1 }
  0xe0   :  { %v176_v41 = vadd.f32 %v175_v39, %v806_v29  ;;  %v177_v42 = vpop.f32.mrb[3].mxu0  ;;  %v820_v43 = vadd.f32 %v247_v40, %v806_v29  ;;  %v249_v44 = vpop.f32.mrb[3].mxu1 }
  0xe1   :  { %v178_v45 = vadd.f32 %v177_v42, %v808_v30  ;;  %v250_v46 = vadd.f32 %v249_v44, %v808_v30 }
  0xe2   :  { %265 = vst [vmem:[#allocation2 + $0x8] sm:$0xff] %v176_v41  ;;  %600 = vmatmul.mubr.msk.f32.vlgmr.msra.gmra.mrb[8].mxu1 %vm297_vm1, %v176_v41  ;;  %277 = vst [vmem:[#allocation2 + $0x68] sm:$0xff] %v820_v43 }
  0xe3   :  { %281 = vst [vmem:[#allocation4 + $0x8] sm:$0xff] %v178_v45  ;;  %v181_v47 = vpop.f32.mrb[4].mxu0  ;;  %293 = vst [vmem:[#allocation4 + $0x68] sm:$0xff] %v250_v46  ;;  %v253_v48 = vpop.f32.mrb[4].mxu1 }
  0xe4   :  { %v182_v49 = vadd.f32 %v181_v47, %v806_v29  ;;  %v183_v50 = vpop.f32.mrb[5].mxu0  ;;  %v828_v51 = vadd.f32 %v253_v48, %v806_v29  ;;  %v255_v52 = vpop.f32.mrb[5].mxu1 }
  0xe5   :  { %v184_v53 = vadd.f32 %v183_v50, %v808_v30  ;;  %v256_v54 = vadd.f32 %v255_v52, %v808_v30 }
  0xe6   :  { %266 = vst [vmem:[#allocation2 + $0x10] sm:$0xff] %v182_v49  ;;  %602 = vmatprep.mubr.msk.f32.mxu1 %vm297_vm1, %v182_v49  ;;  %278 = vst [vmem:[#allocation2 + $0x70] sm:$0xff] %v828_v51 }
  0xe7   :  { %282 = vst [vmem:[#allocation4 + $0x10] sm:$0xff] %v184_v53  ;;  %v187_v55 = vpop.f32.mrb[6].mxu0  ;;  %294 = vst [vmem:[#allocation4 + $0x70] sm:$0xff] %v256_v54  ;;  %v259_v56 = vpop.f32.mrb[6].mxu1 }
  0xe8   :  { %v188_v57 = vadd.f32 %v187_v55, %v806_v29  ;;  %v189_v58 = vpop.f32.mrb[7].mxu0  ;;  %v836_v59 = vadd.f32 %v259_v56, %v806_v29  ;;  %v261_v60 = vpop.f32.mrb[7].mxu1 }
  0xe9   :  { %v190_v61 = vadd.f32 %v189_v58, %v808_v30  ;;  %v262_v62 = vadd.f32 %v261_v60, %v808_v30 }
  0xea   :  { %267 = vst [vmem:[#allocation2 + $0x18] sm:$0xff] %v188_v57  ;;  %603 = vmatmul.mubr.msk.f32.gmra.mrb[10].mxu1 %vm297_vm1, %v188_v57  ;;  %279 = vst [vmem:[#allocation2 + $0x78] sm:$0xff] %v836_v59 }
  0xeb   :  { %283 = vst [vmem:[#allocation4 + $0x18] sm:$0xff] %v190_v61  ;;  %v193_v63 = vpop.f32.mrb[8].mxu0  ;;  %295 = vst [vmem:[#allocation4 + $0x78] sm:$0xff] %v262_v62 }
  0xec   :  { %v194_v0 = vadd.f32 %v193_v63, %v806_v29  ;;  %v195_v1 = vpop.f32.mrb[9].mxu0 }
  0xed   :  { %v196_v2 = vadd.f32 %v195_v1, %v808_v30 }
  0xee   :  { %268 = vst [vmem:[#allocation2 + $0x20] sm:$0xff] %v194_v0  ;;  %605 = vmatprep.mubr.msk.f32.mxu1 %vm297_vm1, %v194_v0 }
  0xef   :  { %284 = vst [vmem:[#allocation4 + $0x20] sm:$0xff] %v196_v2  ;;  %v199_v3 = vpop.f32.mrb[10].mxu0 }
  0xf0   :  { %v200_v4 = vadd.f32 %v199_v3, %v806_v29  ;;  %v201_v5 = vpop.f32.mrb[11].mxu0 }
  0xf1   :  { %v202_v6 = vadd.f32 %v201_v5, %v808_v30 }
  0xf2   :  { %269 = vst [vmem:[#allocation2 + $0x28] sm:$0xff] %v200_v4  ;;  %606 = vmatmul.mubr.msk.f32.gmra.mrb[12].mxu1 %vm297_vm1, %v200_v4 }
  0xf3   :  { %285 = vst [vmem:[#allocation4 + $0x28] sm:$0xff] %v202_v6  ;;  %v205_v7 = vpop.f32.mrb[12].mxu0 }
  0xf4   :  { %v206_v8 = vadd.f32 %v205_v7, %v806_v29  ;;  %v207_v9 = vpop.f32.mrb[13].mxu0 }
  0xf5   :  { %v208_v10 = vadd.f32 %v207_v9, %v808_v30 }
  0xf6   :  { %270 = vst [vmem:[#allocation2 + $0x30] sm:$0xff] %v206_v8  ;;  %608 = vmatprep.mubr.msk.f32.mxu1 %vm297_vm1, %v206_v8 }
  0xf7   :  { %286 = vst [vmem:[#allocation4 + $0x30] sm:$0xff] %v208_v10  ;;  %v211_v11 = vpop.f32.mrb[14].mxu0 }
  0xf8   :  { %v212_v12 = vadd.f32 %v211_v11, %v806_v29  ;;  %v213_v13 = vpop.f32.mrb[15].mxu0 }
  0xf9   :  { %v214_v14 = vadd.f32 %v213_v13, %v808_v30 }
  0xfa   :  { %271 = vst [vmem:[#allocation2 + $0x38] sm:$0xff] %v212_v12  ;;  %609 = vmatmul.mubr.msk.f32.gmra.mrb[14].mxu1 %vm297_vm1, %v212_v12 }
  0xfb   :  { %287 = vst [vmem:[#allocation4 + $0x38] sm:$0xff] %v214_v14  ;;  %v217_v15 = vpop.f32.mrb[16].mxu0 }
  0xfc   :  { %v218_v16 = vadd.f32 %v217_v15, %v806_v29  ;;  %v219_v17 = vpop.f32.mrb[17].mxu0 }
  0xfd   :  { %v220_v18 = vadd.f32 %v219_v17, %v808_v30 }
  0xfe   :  { %272 = vst [vmem:[#allocation2 + $0x40] sm:$0xff] %v218_v16  ;;  %611 = vmatprep.mubr.msk.f32.mxu1 %vm297_vm1, %v218_v16 }
  0xff   :  { %288 = vst [vmem:[#allocation4 + $0x40] sm:$0xff] %v220_v18  ;;  %v223_v19 = vpop.f32.mrb[18].mxu0 }
 0x100   :  { %v224_v20 = vadd.f32 %v223_v19, %v806_v29  ;;  %v225_v21 = vpop.f32.mrb[19].mxu0 }
 0x101   :  { %v226_v22 = vadd.f32 %v225_v21, %v808_v30 }
 0x102   :  { %273 = vst [vmem:[#allocation2 + $0x48] sm:$0xff] %v224_v20  ;;  %612 = vmatmul.mubr.msk.f32.gmra.mrb[16].mxu1 %vm297_vm1, %v224_v20 }
 0x103   :  { %289 = vst [vmem:[#allocation4 + $0x48] sm:$0xff] %v226_v22  ;;  %v229_v23 = vpop.f32.mrb[20].mxu0 }
 0x104   :  { %v230_v24 = vadd.f32 %v229_v23, %v806_v29  ;;  %v231_v25 = vpop.f32.mrb[21].mxu0 }
 0x105   :  { %v232_v26 = vadd.f32 %v231_v25, %v808_v30 }
 0x106   :  { %274 = vst [vmem:[#allocation2 + $0x50] sm:$0xff] %v230_v24  ;;  %614 = vmatprep.mubr.msk.f32.mxu1 %vm297_vm1, %v230_v24 }
 0x107   :  { %290 = vst [vmem:[#allocation4 + $0x50] sm:$0xff] %v232_v26  ;;  %v235_v27 = vpop.f32.mrb[22].mxu0 }
 0x108   :  { %v236_v28 = vadd.f32 %v235_v27, %v806_v29  ;;  %v237_v31 = vpop.f32.mrb[23].mxu0 }
 0x109   :  { %v238_v32 = vadd.f32 %v237_v31, %v808_v30 }
 0x10a   :  { %275 = vst [vmem:[#allocation2 + $0x58] sm:$0xff] %v236_v28  ;;  %615 = vmatmul.mubr.msk.f32.gmra.mrb[18].mxu1 %vm297_vm1, %v236_v28 }
 0x10b   :  { %291 = vst [vmem:[#allocation4 + $0x58] sm:$0xff] %v238_v32  ;;  %617 = vmatprep.mubr.msk.f32.mxu1 %vm297_vm1, %v812_v35 }
 0x10e   :  { %618 = vmatmul.mubr.msk.f32.gmra.mrb[20].mxu1 %vm297_vm1, %v820_v43 }
 0x10f   :  { %620 = vmatprep.mubr.msk.f32.mxu1 %vm297_vm1, %v828_v51 }
 0x112   :  { %621 = vmatmul.mubr.msk.f32.gmra.mrb[22].mxu1 %vm297_vm1, %v836_v59 }
 0x113   :  { %645 = shalt.err (!%p642_p4)
}
 0x114   :  { %s646_s19 = scalar_lea.hbm %s973_s4, 2048 }
 0x115   :  { %p647_p5 = scmp.ne.s32.totalorder %s973_s4, %s646_s19  ;;  %p650_p6 = scmp.lt.u32.totalorder %s646_s19, %s973_s4 }
 0x117   :  { %p652_p7 = pnand %p650_p6, %p647_p5 }
 0x119   :  { %655 = shalt.err (!%p652_p7)
}
 0x11a   :  { %s685_s24 = smov 128   ;;  %s686_s25 = smov 8  }
 0x11b   :  { %522 = dma.vmem_to_hbm [thread:$0]  %s517_s2, 2048, %s973_s4, [#allocation3], %s685_s24, %s685_s24, %s686_s25  }
 0x11c   :  { %s656_s28 = scalar_lea.vmem %s874_s15, 2048  ;;  %p661_p9 = scmp.lt.s32.totalorder %s874_s15, %s874_s15 }
 0x11d   :  { %p657_p8 = scmp.ne.s32.totalorder %s874_s15, %s656_s28  ;;  %p662_p10 = scmp.lt.s32.totalorder %s656_s28, %s656_s28 }
 0x11f   :  { %p663_p11 = por %p662_p10, %p661_p9 }
 0x121   :  { %p664_p12 = pnand %p663_p11, %p657_p8 }
 0x123   :  { %667 = shalt.err (!%p664_p12)
}
 0x124   :  { %s668_s7 = scalar_lea.hbm %s974_s5, 2048 }
 0x125   :  { %p669_p13 = scmp.ne.s32.totalorder %s974_s5, %s668_s7  ;;  %p672_p0 = scmp.lt.u32.totalorder %s668_s7, %s974_s5 }
 0x127   :  { %p674_p1 = pnand %p672_p0, %p669_p13 }
 0x129   :  { %677 = shalt.err (!%p674_p1)
}
 0x12a   :  { %534 = dma.vmem_to_hbm [thread:$0]  %s874_s15, 2048, %s974_s5, [#allocation5], %s685_s24, %s685_s24, %s686_s25   ;;  %vm494_vm2 = vcmask 56320  }
 0x1b5   :  { %v601_v29 = vpop.f32.mrb[8].mxu1 }
 0x1b6   :  { %496 = vst.msk [vmem:[%s975_s6 + $0x8] sm:$0xff] %vm494_vm2, %v601_v29  ;;  %v415_v30 = vpop.f32.mrb[9].mxu1 }
 0x1b7   :  { %495 = vst.msk [vmem:[%s975_s6] sm:$0xff] %vm494_vm2, %v415_v30 }
 0x1bd   :  { %v604_v33 = vpop.f32.mrb[10].mxu1 }
 0x1be   :  { %498 = vst.msk [vmem:[%s975_s6 + $0x18] sm:$0xff] %vm494_vm2, %v604_v33  ;;  %v425_v34 = vpop.f32.mrb[11].mxu1 }
 0x1bf   :  { %497 = vst.msk [vmem:[%s975_s6 + $0x10] sm:$0xff] %vm494_vm2, %v425_v34 }
 0x1c5   :  { %v607_v35 = vpop.f32.mrb[12].mxu1 }
 0x1c6   :  { %500 = vst.msk [vmem:[%s975_s6 + $0x28] sm:$0xff] %vm494_vm2, %v607_v35  ;;  %v435_v36 = vpop.f32.mrb[13].mxu1 }
 0x1c7   :  { %499 = vst.msk [vmem:[%s975_s6 + $0x20] sm:$0xff] %vm494_vm2, %v435_v36 }
 0x1cd   :  { %v610_v37 = vpop.f32.mrb[14].mxu1 }
 0x1ce   :  { %502 = vst.msk [vmem:[%s975_s6 + $0x38] sm:$0xff] %vm494_vm2, %v610_v37  ;;  %v445_v38 = vpop.f32.mrb[15].mxu1 }
 0x1cf   :  { %501 = vst.msk [vmem:[%s975_s6 + $0x30] sm:$0xff] %vm494_vm2, %v445_v38 }
 0x1d5   :  { %v613_v39 = vpop.f32.mrb[16].mxu1 }
 0x1d6   :  { %504 = vst.msk [vmem:[%s975_s6 + $0x48] sm:$0xff] %vm494_vm2, %v613_v39  ;;  %v455_v40 = vpop.f32.mrb[17].mxu1 }
 0x1d7   :  { %503 = vst.msk [vmem:[%s975_s6 + $0x40] sm:$0xff] %vm494_vm2, %v455_v40 }
 0x1dd   :  { %v616_v41 = vpop.f32.mrb[18].mxu1 }
 0x1de   :  { %506 = vst.msk [vmem:[%s975_s6 + $0x58] sm:$0xff] %vm494_vm2, %v616_v41  ;;  %v465_v42 = vpop.f32.mrb[19].mxu1 }
 0x1df   :  { %505 = vst.msk [vmem:[%s975_s6 + $0x50] sm:$0xff] %vm494_vm2, %v465_v42 }
 0x1e1   :  { %v619_v43 = vpop.f32.mrb[20].mxu1 }
 0x1e2   :  { %508 = vst.msk [vmem:[%s975_s6 + $0x68] sm:$0xff] %vm494_vm2, %v619_v43  ;;  %v475_v44 = vpop.f32.mrb[21].mxu1 }
 0x1e3   :  { %507 = vst.msk [vmem:[%s975_s6 + $0x60] sm:$0xff] %vm494_vm2, %v475_v44 }
 0x1e5   :  { %v622_v45 = vpop.f32.mrb[22].mxu1 }
 0x1e6   :  { %510 = vst.msk [vmem:[%s975_s6 + $0x78] sm:$0xff] %vm494_vm2, %v622_v45  ;;  %v485_v46 = vpop.f32.mrb[23].mxu1 }
 0x1e7   :  { %509 = vst.msk [vmem:[%s975_s6 + $0x70] sm:$0xff] %vm494_vm2, %v485_v46 }
 0x1e8   :  { %678 = dma.done.wait [#allocation3], 2048  }
 0x1e9   :  { %679 = vsyncadd [#allocation3], 4294965248 }
 0x1ea   :  { %680 = dma.done.wait [#allocation5], 2048  }
 0x1eb   :  { %681 = vsyncadd [#allocation5], 4294965248 }
 0x1ec   :  { %545 = vsyncpa [#allocation3], 1 }
 0x1ed   :  { %546 = vsyncpa [#allocation5], 1 }

</bundles_post_ra>
